<compile_context>
chip_gen: v6e
topology: v6e:2x2x1
jax: 0.10.0
libtpu: 0.0.40
codegen_flags: <defaults>
</compile_context>

<pallas_src>
import functools

import jax
import jax.numpy as jnp
import numpy as np
from jax import lax
from jax.experimental import pallas as pl
from jax.experimental.pallas import tpu as pltpu


def _round_up(x, m):
    return (x + m - 1) // m * m


# ---------------------------------------------------------------------------
# Pass 1: per-edge transform  y[e] = ew[e] * (x[src[e]] @ W_{rel[e]})
#   grid = (edge_tiles [parallel], node_chunks [arbitrary/reduction])
# ---------------------------------------------------------------------------
def _edge_transform_kernel(src_ref, rel_ref, ew_ref, colrel_ref, xrep_ref,
                           wpk_ref, y_ref, msg_acc):
    j = pl.program_id(1)
    nj = pl.num_programs(1)
    e_tile = src_ref.shape[0]
    chunk = xrep_ref.shape[0]

    @pl.when(j == 0)
    def _init():
        msg_acc[...] = jnp.zeros_like(msg_acc)

    # Gather this node chunk: bf16 one-hot (exact) against local node ids -> MXU.
    local_src = src_ref[...] - j * chunk                              # (E_tile, 1)
    g_iota = lax.broadcasted_iota(jnp.int32, (e_tile, chunk), 1)
    g_oh = (g_iota == local_src).astype(jnp.bfloat16)                 # (E_tile, chunk)
    msg_acc[...] += jnp.dot(g_oh, xrep_ref[...],
                            preferred_element_type=jnp.float32)       # (E_tile, RD_pad)

    @pl.when(j == nj - 1)
    def _finish():
        # Relation selection: keep only columns belonging to this edge's relation.
        rel_mask = colrel_ref[...] == rel_ref[...]                    # (E_tile, RD_pad)
        msg_pk = jnp.where(rel_mask, msg_acc[...] * ew_ref[...], 0.0)
        y = jnp.dot(msg_pk.astype(jnp.bfloat16), wpk_ref[...],
                    preferred_element_type=jnp.float32)               # (E_tile, O_pad)
        y_ref[...] = y.astype(y_ref.dtype)


# ---------------------------------------------------------------------------
# Pass 2: scatter-add per-edge outputs into nodes, then bias + relu
#   grid = (node_tiles [parallel], edge_tiles [arbitrary/reduction])
# ---------------------------------------------------------------------------
def _scatter_combine_kernel(dst_ref, y_ref, b_ref, out_ref):
    k = pl.program_id(1)
    nk = pl.num_programs(1)
    node_tile = out_ref.shape[0]
    e_tile = y_ref.shape[0]

    @pl.when(k == 0)
    def _init():
        out_ref[...] = jnp.zeros_like(out_ref)

    # Transposed scatter one-hot: (node_tile, E_tile), consumed by a plain matmul.
    local_dst = dst_ref[...] - pl.program_id(0) * node_tile           # (1, E_tile)
    s_iota = lax.broadcasted_iota(jnp.int32, (node_tile, e_tile), 0)
    d_oht = (s_iota == local_dst).astype(jnp.bfloat16)                # (node_tile, E_tile)
    out_ref[...] += jnp.dot(d_oht, y_ref[...],
                            preferred_element_type=jnp.float32)       # (node_tile, O_pad)

    @pl.when(k == nk - 1)
    def _finish():
        out_ref[...] = jnp.maximum(out_ref[...] + b_ref[...], 0.0)


def geometric_relational_graph_conv(x, edge_list, edge_weight, weight, bias, *,
                                    num_relation, node_tile=256, edge_tile=256,
                                    node_chunk=256,
                                    vmem_limit_bytes=48 * 1024 * 1024):
    """x: (N, D) f32; edge_list: (E, 3) i32 [src, dst, rel]; edge_weight: (E,) f32;
       weight: (O, R*D) f32 (nn.Linear layout); bias: (O,) f32.

    Note: defaults target v6e/v7x MXU (256 tiles); 48 MiB VMEM cap respects v7x's
    64 MiB/TC while leaving room on v5e/v6e.  pl.Buffered(1) on the grid-invariant
    specs would shave a little more VMEM but the invariant inputs here are tiny.
    """
    N, D = x.shape
    E = edge_list.shape[0]
    O = weight.shape[0]
    R = num_relation

    if N == 0:
        return jnp.zeros((0, O), jnp.float32)
    if E == 0:
        # Empty edge grid would leave accumulators uninitialized; short-circuit.
        return jnp.broadcast_to(jax.nn.relu(bias.astype(jnp.float32)), (N, O))

    rd = R * D
    rd_pad = _round_up(rd, 128)
    o_pad = _round_up(O, 128)
    e_pad = _round_up(E, edge_tile)
    n_pad_g = _round_up(N, node_chunk)   # node padding for the gather pass
    n_pad_o = _round_up(N, node_tile)    # node padding for the output pass

    # ---- host-side layout prep ------------------------------------------------
    # Replicate x's D features R times so all relation slabs come from one gather,
    # and pack the whole R*D contraction into one lane-aligned slab.
    x_rep = jnp.concatenate([x.astype(jnp.float32)] * R, axis=1)      # (N, R*D)
    x_rep = jnp.zeros((n_pad_g, rd_pad), jnp.bfloat16).at[:N, :rd].set(
        x_rep.astype(jnp.bfloat16))

    src_col = jnp.zeros((e_pad, 1), jnp.int32).at[:E, 0].set(
        edge_list[:, 0].astype(jnp.int32))
    rel_col = jnp.zeros((e_pad, 1), jnp.int32).at[:E, 0].set(
        edge_list[:, 2].astype(jnp.int32))
    ew_col = jnp.zeros((e_pad, 1), jnp.float32).at[:E, 0].set(
        edge_weight.astype(jnp.float32))          # padded edges: weight 0 -> no-op
    dst_row = jnp.zeros((1, e_pad), jnp.int32).at[0, :E].set(
        edge_list[:, 1].astype(jnp.int32))        # transposed: lane-dense row

    # column -> relation map for the packed layout (R for padded columns -> never matches)
    cols = jnp.arange(rd_pad, dtype=jnp.int32)
    col_rel = jnp.where(cols < rd, cols // D, R).reshape(1, rd_pad)

    # packed weight: W_pk[r*D+d, o] = weight[o, r*D+d]
    w_pk = jnp.zeros((rd_pad, o_pad), jnp.bfloat16).at[:rd, :O].set(
        weight.astype(jnp.float32).T.astype(jnp.bfloat16))
    b_p = jnp.zeros((1, o_pad), jnp.float32).at[0, :O].set(bias.astype(jnp.float32))

    cparams = pltpu.CompilerParams(
        dimension_semantics=("parallel", "arbitrary"),
        vmem_limit_bytes=vmem_limit_bytes,
    )

    # ---- pass 1: per-edge transform -------------------------------------------
    y = pl.pallas_call(
        _edge_transform_kernel,
        out_shape=jax.ShapeDtypeStruct((e_pad, o_pad), jnp.bfloat16),
        grid_spec=pltpu.PrefetchScalarGridSpec(
            num_scalar_prefetch=0,
            grid=(e_pad // edge_tile, n_pad_g // node_chunk),
            in_specs=[
                pl.BlockSpec((edge_tile, 1), lambda i, j: (i, 0)),         # src
                pl.BlockSpec((edge_tile, 1), lambda i, j: (i, 0)),         # rel
                pl.BlockSpec((edge_tile, 1), lambda i, j: (i, 0)),         # edge weight
                pl.BlockSpec((1, rd_pad), lambda i, j: (0, 0)),            # col->rel map
                pl.BlockSpec((node_chunk, rd_pad), lambda i, j: (j, 0)),   # x_rep chunk
                pl.BlockSpec((rd_pad, o_pad), lambda i, j: (0, 0)),        # packed weight
            ],
            out_specs=pl.BlockSpec((edge_tile, o_pad), lambda i, j: (i, 0)),
            scratch_shapes=[pltpu.VMEM((edge_tile, rd_pad), jnp.float32)],
        ),
        compiler_params=cparams,
    )(src_col, rel_col, ew_col, col_rel, x_rep, w_pk)

    # ---- pass 2: scatter + bias + relu -----------------------------------------
    out = pl.pallas_call(
        _scatter_combine_kernel,
        out_shape=jax.ShapeDtypeStruct((n_pad_o, o_pad), jnp.float32),
        grid_spec=pltpu.PrefetchScalarGridSpec(
            num_scalar_prefetch=0,
            grid=(n_pad_o // node_tile, e_pad // edge_tile),
            in_specs=[
                pl.BlockSpec((1, edge_tile), lambda i, k: (0, k)),         # dst row
                pl.BlockSpec((edge_tile, o_pad), lambda i, k: (k, 0)),     # per-edge y
                pl.BlockSpec((1, o_pad), lambda i, k: (0, 0)),             # bias
            ],
            out_specs=pl.BlockSpec((node_tile, o_pad), lambda i, k: (i, 0)),
        ),
        compiler_params=cparams,
    )(dst_row, y, b_p)

    # Padded node rows [N:n_pad_o) hold relu(bias); sliced off here.
    return out[:N, :O]


def _reference(x, edge_list, edge_weight, weight, bias, *, num_relation):
    N, D = x.shape
    R = num_relation
    src, dst, rel = edge_list[:, 0], edge_list[:, 1], edge_list[:, 2]
    msg = x[src] * edge_weight[:, None]
    node_out = dst * R + rel
    upd = jax.ops.segment_sum(msg, node_out, num_segments=N * R)
    upd = upd.reshape(N, R * D)
    return jax.nn.relu(upd @ weight.T + bias)


if __name__ == "__main__":
    # Small deterministic problem that still exercises multi-tile grids:
    # pass 1: 3 edge tiles x 2 node chunks; pass 2: 2 node tiles x 3 edge tiles.
    num_node = 200
    input_dim = 16
    output_dim = 32
    num_relation = 3
    num_edge = 300

    key = jax.random.PRNGKey(0)
    k_x, k_src, k_dst, k_rel, k_w, k_lin, k_b = jax.random.split(key, 7)

    x = jax.random.normal(k_x, (num_node, input_dim), dtype=jnp.float32)
    src = jax.random.randint(k_src, (num_edge,), 0, num_node, dtype=jnp.int32)
    dst = jax.random.randint(k_dst, (num_edge,), 0, num_node, dtype=jnp.int32)
    rel = jax.random.randint(k_rel, (num_edge,), 0, num_relation, dtype=jnp.int32)
    edge_list = jnp.stack([src, dst, rel], axis=1)
    edge_weight = jax.random.uniform(k_w, (num_edge,), dtype=jnp.float32)

    # nn.Linear(num_relation * input_dim, output_dim) parameters (deterministic init).
    fan_in = num_relation * input_dim
    bound = 1.0 / np.sqrt(fan_in)
    weight = jax.random.uniform(
        k_lin, (output_dim, fan_in), minval=-bound, maxval=bound, dtype=jnp.float32)
    bias = jax.random.uniform(
        k_b, (output_dim,), minval=-bound, maxval=bound, dtype=jnp.float32)

    out = geometric_relational_graph_conv(
        x, edge_list, edge_weight, weight, bias,
        num_relation=num_relation, node_tile=128, edge_tile=128, node_chunk=128)
    out = jax.block_until_ready(out)

    ref = _reference(x, edge_list, edge_weight, weight, bias,
                     num_relation=num_relation)
    # bf16 matmul operands (f32 accumulation) -> loosened tolerance vs exact-f32 ref.
    np.testing.assert_allclose(np.asarray(out), np.asarray(ref),
                               rtol=2e-2, atol=2e-2)
    print("KERNEL_OK")
</pallas_src>

<mosaic_0001>
module attributes {stable_mosaic.version = 11 : i64} {
  func.func @_edge_transform_kernel(%arg0: i32, %arg1: i32, %arg2: memref<128x1xi32, #tpu.memory_space<vmem>>, %arg3: memref<128x1xi32, #tpu.memory_space<vmem>>, %arg4: memref<128x1xf32, #tpu.memory_space<vmem>>, %arg5: memref<1x128xi32, #tpu.memory_space<vmem>>, %arg6: memref<128x128xbf16, #tpu.memory_space<vmem>>, %arg7: memref<128x128xbf16, #tpu.memory_space<vmem>>, %arg8: memref<128x128xbf16, #tpu.memory_space<vmem>>, %arg9: memref<128x128xf32, #tpu.memory_space<vmem>>) attributes {dimension_semantics = [#tpu.dimension_semantics<parallel>, #tpu.dimension_semantics<arbitrary>], iteration_bounds = array<i64: 3, 2>, scalar_prefetch = 0 : i64, scratch_operands = 1 : i64, tpu.core_type = #tpu.core_type<tc>, window_params = [{transform_indices = @transform_0, window_bounds = array<i64: 128, 1>}, {transform_indices = @transform_1, window_bounds = array<i64: 128, 1>}, {transform_indices = @transform_2, window_bounds = array<i64: 128, 1>}, {pipeline_mode = #tpu.pipeline_mode<synchronous>, transform_indices = @transform_3, window_bounds = array<i64: 1, 128>}, {transform_indices = @transform_4, window_bounds = array<i64: 128, 128>}, {pipeline_mode = #tpu.pipeline_mode<synchronous>, transform_indices = @transform_5, window_bounds = array<i64: 128, 128>}, {transform_indices = @transform_6, window_bounds = array<i64: 128, 128>}]} {
    %c0_i32 = arith.constant 0 : i32
    %0 = arith.cmpi eq, %arg1, %c0_i32 : i32
    %1 = arith.extui %0 : i1 to i32
    %c0_i32_0 = arith.constant 0 : i32
    %2 = arith.cmpi ne, %1, %c0_i32_0 : i32
    scf.if %2 {
      %cst_9 = arith.constant 0.000000e+00 : f32
      %21 = vector.broadcast %cst_9 : f32 to vector<128x128xf32>
      %c0_10 = arith.constant 0 : index
      %c0_11 = arith.constant 0 : index
      %22 = vector.load %arg9[%c0_10, %c0_11] : memref<128x128xf32, #tpu.memory_space<vmem>>, vector<128x128xf32>
      tpu.vector_store %arg9[%c0_10, %c0_11], %21 {strides = array<i32>} : memref<128x128xf32, #tpu.memory_space<vmem>>, vector<128x128xf32>,
    } else {
    }
    %c0 = arith.constant 0 : index
    %c0_1 = arith.constant 0 : index
    %3 = vector.load %arg2[%c0, %c0_1] : memref<128x1xi32, #tpu.memory_space<vmem>>, vector<128x1xi32>
    %c128_i32 = arith.constant 128 : i32
    %4 = arith.muli %arg1, %c128_i32 : i32
    %5 = vector.broadcast %4 : i32 to vector<128x1xi32>
    %6 = arith.subi %3, %5 : vector<128x1xi32>
    %7 = tpu.iota {dimensions = array<i32: 1>} : vector<128x128xi32>
    %8 = vector.broadcast %6 : vector<128x1xi32> to vector<128x128xi32>
    %9 = arith.cmpi eq, %7, %8 : vector<128x128xi32>
    %10 = arith.extui %9 : vector<128x128xi1> to vector<128x128xi32>
    %11 = arith.sitofp %10 : vector<128x128xi32> to vector<128x128xf32>
    %12 = arith.truncf %11 : vector<128x128xf32> to vector<128x128xbf16>
    %c0_2 = arith.constant 0 : index
    %c0_3 = arith.constant 0 : index
    %13 = vector.load %arg9[%c0_2, %c0_3] : memref<128x128xf32, #tpu.memory_space<vmem>>, vector<128x128xf32>
    %c0_4 = arith.constant 0 : index
    %c0_5 = arith.constant 0 : index
    %14 = vector.load %arg6[%c0_4, %c0_5] : memref<128x128xbf16, #tpu.memory_space<vmem>>, vector<128x128xbf16>
    %cst = arith.constant dense<0.000000e+00> : vector<128x128xf32>
    %15 = tpu.matmul %12, %14, %cst {dimension_numbers = #tpu.dot_dimension_numbers<[1], [0], [0], [1], [0, 0, 1, 1], [], []>} : vector<128x128xbf16>, vector<128x128xbf16>, vector<128x128xf32> -> vector<128x128xf32>
    %16 = arith.addf %13, %15 : vector<128x128xf32>
    %c0_6 = arith.constant 0 : index
    %c0_7 = arith.constant 0 : index
    %17 = vector.load %arg9[%c0_6, %c0_7] : memref<128x128xf32, #tpu.memory_space<vmem>>, vector<128x128xf32>
    tpu.vector_store %arg9[%c0_6, %c0_7], %16 {strides = array<i32>} : memref<128x128xf32, #tpu.memory_space<vmem>>, vector<128x128xf32>,
    %c1_i32 = arith.constant 1 : i32
    %18 = arith.cmpi eq, %arg1, %c1_i32 : i32
    %19 = arith.extui %18 : i1 to i32
    %c0_i32_8 = arith.constant 0 : i32
    %20 = arith.cmpi ne, %19, %c0_i32_8 : i32
    scf.if %20 {
      %c0_9 = arith.constant 0 : index
      %c0_10 = arith.constant 0 : index
      %21 = vector.load %arg5[%c0_9, %c0_10] : memref<1x128xi32, #tpu.memory_space<vmem>>, vector<1x128xi32>
      %c0_11 = arith.constant 0 : index
      %c0_12 = arith.constant 0 : index
      %22 = vector.load %arg3[%c0_11, %c0_12] : memref<128x1xi32, #tpu.memory_space<vmem>>, vector<128x1xi32>
      %23 = vector.broadcast %21 : vector<1x128xi32> to vector<128x128xi32>
      %24 = vector.broadcast %22 : vector<128x1xi32> to vector<128x128xi32>
      %25 = arith.cmpi eq, %23, %24 : vector<128x128xi32>
      %c0_13 = arith.constant 0 : index
      %c0_14 = arith.constant 0 : index
      %26 = vector.load %arg9[%c0_13, %c0_14] : memref<128x128xf32, #tpu.memory_space<vmem>>, vector<128x128xf32>
      %c0_15 = arith.constant 0 : index
      %c0_16 = arith.constant 0 : index
      %27 = vector.load %arg4[%c0_15, %c0_16] : memref<128x1xf32, #tpu.memory_space<vmem>>, vector<128x1xf32>
      %28 = vector.broadcast %27 : vector<128x1xf32> to vector<128x128xf32>
      %29 = arith.mulf %26, %28 : vector<128x128xf32>
      %cst_17 = arith.constant 0.000000e+00 : f32
      %30 = vector.broadcast %cst_17 : f32 to vector<128x128xf32>
      %31 = arith.select %25, %29, %30 : vector<128x128xi1>, vector<128x128xf32>
      %32 = arith.truncf %31 : vector<128x128xf32> to vector<128x128xbf16>
      %c0_18 = arith.constant 0 : index
      %c0_19 = arith.constant 0 : index
      %33 = vector.load %arg7[%c0_18, %c0_19] : memref<128x128xbf16, #tpu.memory_space<vmem>>, vector<128x128xbf16>
      %cst_20 = arith.constant dense<0.000000e+00> : vector<128x128xf32>
      %34 = tpu.matmul %32, %33, %cst_20 {dimension_numbers = #tpu.dot_dimension_numbers<[1], [0], [0], [1], [0, 0, 1, 1], [], []>} : vector<128x128xbf16>, vector<128x128xbf16>, vector<128x128xf32> -> vector<128x128xf32>
      %35 = arith.truncf %34 : vector<128x128xf32> to vector<128x128xbf16>
      %c0_21 = arith.constant 0 : index
      %c0_22 = arith.constant 0 : index
      %36 = vector.load %arg8[%c0_21, %c0_22] : memref<128x128xbf16, #tpu.memory_space<vmem>>, vector<128x128xbf16>
      tpu.vector_store %arg8[%c0_21, %c0_22], %35 {strides = array<i32>} : memref<128x128xbf16, #tpu.memory_space<vmem>>, vector<128x128xbf16>,
    } else {
    }
    return
  }
  func.func @transform_0(%arg0: i32, %arg1: i32) -> (i32, i32) {
    %c0_i32 = arith.constant 0 : i32
    %c0_i32_0 = arith.constant 0 : i32
    return %arg0, %c0_i32 : i32, i32
  }
  func.func @transform_1(%arg0: i32, %arg1: i32) -> (i32, i32) {
    %c0_i32 = arith.constant 0 : i32
    %c0_i32_0 = arith.constant 0 : i32
    return %arg0, %c0_i32 : i32, i32
  }
  func.func @transform_2(%arg0: i32, %arg1: i32) -> (i32, i32) {
    %c0_i32 = arith.constant 0 : i32
    %c0_i32_0 = arith.constant 0 : i32
    return %arg0, %c0_i32 : i32, i32
  }
  func.func @transform_3(%arg0: i32, %arg1: i32) -> (i32, i32) {
    %c0_i32 = arith.constant 0 : i32
    %c0_i32_0 = arith.constant 0 : i32
    %c0_i32_1 = arith.constant 0 : i32
    return %c0_i32, %c0_i32_0 : i32, i32
  }
  func.func @transform_4(%arg0: i32, %arg1: i32) -> (i32, i32) {
    %c0_i32 = arith.constant 0 : i32
    %c0_i32_0 = arith.constant 0 : i32
    return %arg1, %c0_i32 : i32, i32
  }
  func.func @transform_5(%arg0: i32, %arg1: i32) -> (i32, i32) {
    %c0_i32 = arith.constant 0 : i32
    %c0_i32_0 = arith.constant 0 : i32
    %c0_i32_1 = arith.constant 0 : i32
    return %c0_i32, %c0_i32_0 : i32, i32
  }
  func.func @transform_6(%arg0: i32, %arg1: i32) -> (i32, i32) {
    %c0_i32 = arith.constant 0 : i32
    %c0_i32_0 = arith.constant 0 : i32
    return %arg0, %c0_i32 : i32, i32
  }
}

</mosaic_0001>

<bundles_post_ra>
// kernel: tpu_custom_call.1
= control target key start
LH: loop header
LB: loop body
LE: loop exit
PB: predicated region body
PF: predicated region fallthrough
CT: control target
= control target key end

     0   :  { %11 = vsyncpa [#allocation4], 0  ;;  %s2130_s0 = inlined_call_operand.vmem [shape: s32[384,1], index: 0, kind: input, shape index: {}]   ;;  %s2131_s1 = inlined_call_operand.vmem [shape: s32[384,1], index: 1, kind: input, shape index: {}]   ;;  %s2132_s2 = inlined_call_operand.vmem [shape: f32[384,1], index: 2, kind: input, shape index: {}]   ;;  %s2133_s3 = inlined_call_operand.vmem [shape: s32[1,128], index: 3, kind: input, shape index: {}]   ;;  %s2134_s4 = inlined_call_operand.vmem [shape: bf16[256,128], index: 4, kind: input, shape index: {}]   ;;  %s2135_s5 = inlined_call_operand.vmem [shape: bf16[128,128], index: 5, kind: input, shape index: {}]   ;;  %s2136_s6 = inlined_call_operand.hbm [shape: bf16[384,128], index: 6, kind: output, shape index: {}]  }
   0x1   :  { %13 = vsyncpa [#allocation4 + $0x1], 0  ;;  %s1842_s21 = smov 0   ;;  %s1844_s22 = smov 0  }
   0x2   :  { %s1846_s23 = smov 0   ;;  %s1848_s24 = smov 0  }
   0x3   :  { %s1850_s25 = smov 0   ;;  %s1852_s26 = smov 0  }
   0x4   :  { %s1854_s27 = smov 0   ;;  %s1856_s28 = smov 0  }
   0x5 LB: > { %2141 = sst [smem:[#allocation6_spill]] %s1790_s26  ;;  %s1306_s29 = sadd.s32 4294967295, %s1798_s28   ;;  %s1798_s28 = sphi %s1856_s28, %s19_s28   ;;  %s1794_s27 = sphi %s1854_s27, %s2153_s27   ;;  %s1790_s26 = sphi %s1852_s26, %s2152_s26   ;;  %s1786_s25 = sphi %s1850_s25, %s2151_s25   ;;  %s1782_s24 = sphi %s1848_s24, %s2150_s24   ;;  %s1778_s23 = sphi %s1846_s23, %s2156_s23   ;;  %s1774_s22 = sphi %s1844_s22, %s2155_s22   ;;  %s1770_s21 = sphi %s1842_s21, %s2154_s21  }
   0x6   : > { %2142 = sst [smem:[#allocation7_spill]] %s1794_s27  ;;  %s1307_s30 = sadd.s32 4294967294, %s1798_s28  }
   0x7   : > { %s28_s7 = sadd.s32 1, %s1790_s26  ;;  %s31_s8 = sadd.s32 1, %s1794_s27 }
   0x8   : > { %p29_p0 = scmp.ge.s32.totalorder %s28_s7, 2  ;;  %p194_p1 = scmp.ne.s32.totalorder %s1778_s23, %s1774_s22 }
   0x9   : > { %p195_p2 = scmp.eq.s32.totalorder %s1306_s29, 5  ;;  %p200_p4 = scmp.ne.s32.totalorder %s1774_s22, %s1770_s21 }
   0xa   : > { %s2158_s7 = smov (%p29_p0, %s28_s7), 0  ;;  %s2160_s8 = smov (!%p29_p0, %s31_s8), %s1794_s27 }
   0xb   : > { %2143 = sst [smem:[#allocation8_spill]] %s2158_s7  ;;  %p1891_p3 = por %p195_p2, %p194_p1 }
   0xc   : > { %p33_p5 = scmp.ge.s32.totalorder %s2160_s8, 3  ;;  %p201_p6 = scmp.eq.s32.totalorder %s1307_s30, 5 }
   0xd   : > { %p1310_p7 = scmp.ge.s32.totalorder %s1798_s28, 1  ;;  %p261_p8 = scmp.lt.s32.totalorder %s1798_s28, 7 }
   0xe   : > { %s2162_s8 = smov (%p33_p5, %s2160_s8), 0  ;;  %p1901_p9 = por %p201_p6, %p200_p4 }
   0xf   : > { %2145 = sst [smem:[#allocation9_spill]] %s2162_s8  ;;  %p262_p10 = pnand %p1310_p7, %p261_p8 }
  0x10   : > { %s181_s11 = ssub.s32 %s1794_s27, %s2162_s8  ;;  %s184_s12 = sadd.s32 1, %s1778_s23 }
  0x11   : > { %p182_p11 = scmp.eq.s32.totalorder %s181_s11, 0  ;;  %265 = sbr.rel (%p262_p10) target bundleno = 817 (0x331), region = 44 }
  0x12   : > { %s2139_s14 = sand.u32 (!%p262_p10), 1, %s1774_s22   ;;  %s1312_s15 = sshll.u32 (!%p262_p10), %s1786_s25, 4 }
  0x13   : > { %s1909_s13 = scalar_select %p182_p11, %s1778_s23, %s184_s12  }
  0x14   : > { %s1311_s16 = sshll.u32 (!%p262_p10), %s2139_s14, 6  ;;  %p307_p12 = scmp.lt.s32.totalorder (!%p262_p10), %s1312_s15, 47 }
  0x15   : > { %2147 = sst [smem:[#allocation10_spill]] %s1909_s13  ;;  %s1318_s17 = sshll.u32 (!%p262_p10), %s1782_s24, 4 }
  0x16   : > { %s2164_s15 = smov (!%p307_p12, %s1312_s15), 47  ;;  %p325_p13 = scmp.lt.s32.totalorder %s1318_s17, 31 }
  0x17   : > { %s1313_s18 = sshll.u32 %s2164_s15, 3  ;;  %s1936_s19 = scalar_lea.vmem [#allocation3], %s1311_s16 }
  0x18   : > { %s1919_s29 = scalar_lea.vmem %s2130_s0, %s1313_s18  ;;  %s1924_s12 = scalar_lea.vmem %s2131_s1, %s1313_s18 }
  0x19   : > { %s1929_s27 = scalar_lea.vmem %s2132_s2, %s1313_s18  ;;  %s2166_s17 = smov (!%p325_p13, %s1318_s17), 31 }
  0x1a   : > { %s1319_s14 = sshll.u32 %s2166_s17, 2  ;;  %p1320_p0 = scmp.ne.s32.totalorder %s1782_s24, 0 }
  0x1b   : > { %s1934_s15 = scalar_lea.vmem %s2134_s4, %s1319_s14 }
  0x1c   : > { %335 = sbr.rel (%p1320_p0) target bundleno = 42 (0x2a), region = 48 }
  0x21   : > { %v1800_v0 = vmov 0.0  }
  0x22   : > { %336 = vst [vmem:[#allocation2 + $0x30] sm:$0xff] %v1800_v0  ;;  %337 = vst [vmem:[#allocation2] sm:$0xff] %v1800_v0 }
  0x23   : > { %338 = vst [vmem:[#allocation2 + $0x58] sm:$0xff] %v1800_v0  ;;  %339 = vst [vmem:[#allocation2 + $0x18] sm:$0xff] %v1800_v0 }
  0x24   : > { %340 = vst [vmem:[#allocation2 + $0x50] sm:$0xff] %v1800_v0  ;;  %341 = vst [vmem:[#allocation2 + $0x68] sm:$0xff] %v1800_v0 }
  0x25   : > { %342 = vst [vmem:[#allocation2 + $0x8] sm:$0xff] %v1800_v0  ;;  %343 = vst [vmem:[#allocation2 + $0x48] sm:$0xff] %v1800_v0 }
  0x26   : > { %344 = vst [vmem:[#allocation2 + $0x40] sm:$0xff] %v1800_v0  ;;  %345 = vst [vmem:[#allocation2 + $0x20] sm:$0xff] %v1800_v0 }
  0x27   : > { %346 = vst [vmem:[#allocation2 + $0x10] sm:$0xff] %v1800_v0  ;;  %347 = vst [vmem:[#allocation2 + $0x38] sm:$0xff] %v1800_v0 }
  0x28   : > { %348 = vst [vmem:[#allocation2 + $0x60] sm:$0xff] %v1800_v0  ;;  %349 = vst [vmem:[#allocation2 + $0x70] sm:$0xff] %v1800_v0 }
  0x29   : > { %350 = vst [vmem:[#allocation2 + $0x78] sm:$0xff] %v1800_v0  ;;  %351 = vst [vmem:[#allocation2 + $0x28] sm:$0xff] %v1800_v0 }
  0x2a PF: > { %v360_v1 = vld [vmem:[%s1919_s29 + $0x40] sm:$0xff]  ;;  %s1321_s26 = sshll.u32 %s1782_s24, 7  ;;  %v1801_v3 = vmov 0   ;;  %v361_v5 = vld [vmem:[%s1919_s29 + $0x48] sm:$0xff]  ;;  %v355_v11 = vld [vmem:[%s1919_s29 + $0x18] sm:$0xff]  ;;  %v386_v43 = vlaneseq  ;;  %p1362_p1 = scmp.ne.s32.totalorder %s1782_s24, 1 }
  0x2b   : > { %v352_v2 = vld [vmem:[%s1919_s29] sm:$0xff]  ;;  %1687 = vset.pattern.permute.xlu1 %v1801_v3  ;;  %1686 = vset.pattern.permute.xlu0 %v1801_v3  ;;  %v1942_v4 = vstv %s1321_s26  ;;  %v353_v6 = vld [vmem:[%s1919_s29 + $0x8] sm:$0xff]  ;;  %v354_v12 = vld [vmem:[%s1919_s29 + $0x10] sm:$0xff]  ;;  %v1802_v49 = vmov 1.0|1.0  }
  0x2c   : > { %v378_v7 = vsub.s32 %v360_v1, %v1942_v4  ;;  %v370_v8 = vsub.s32 %v352_v2, %v1942_v4  ;;  %v379_v9 = vsub.s32 %v361_v5, %v1942_v4  ;;  %v371_v10 = vsub.s32 %v353_v6, %v1942_v4  ;;  %v1688_v13 = vld [vmem:[%s1934_s15 + $0x38] sm:$0xff]   ;;  %v1689_v14 = vld [vmem:[%s1934_s15 + $0x30] sm:$0xff]   ;;  %v1690_v19 = vld [vmem:[%s1934_s15 + $0x28] sm:$0xff]  }
  0x2d   : > { %v373_v15 = vsub.s32 %v355_v11, %v1942_v4  ;;  %v372_v16 = vsub.s32 %v354_v12, %v1942_v4  ;;  %v363_v17 = vld [vmem:[%s1919_s29 + $0x58] sm:$0xff]  ;;  %v362_v18 = vld [vmem:[%s1919_s29 + $0x50] sm:$0xff]  ;;  %1513 = vmatprep.subr.bf16.mxu0 %v1688_v13  ;;  %1577 = vmatprep.subr.bf16.mxu1 %v1688_v13  ;;  %v357_v22 = vld [vmem:[%s1919_s29 + $0x28] sm:$0xff]  ;;  %v387_v46 = vand.u32 127, %v386_v43 }
  0x2e   : > { %413 = vperm.xlu1 %1687, %v378_v7   ;;  %389 = vperm.xlu0 %1686, %v370_v8   ;;  %v381_v20 = vsub.s32 %v363_v17, %v1942_v4  ;;  %v380_v21 = vsub.s32 %v362_v18, %v1942_v4  ;;  %v356_v23 = vld [vmem:[%s1919_s29 + $0x20] sm:$0xff]  ;;  %v375_v25 = vsub.s32 %v357_v22, %v1942_v4  ;;  %v365_v27 = vld [vmem:[%s1919_s29 + $0x68] sm:$0xff]  ;;  %v1692_v29 = vld [vmem:[%s1934_s15 + $0x18] sm:$0xff]  }
  0x2f   : > { %1514 = vmatpush3.bf16.msra.mxu0 %v1688_v13  ;;  %1585 = vmatpush3.bf16.msra.mxu1 %v1688_v13  ;;  %v1691_v24 = vld [vmem:[%s1934_s15 + $0x20] sm:$0xff]   ;;  %v374_v26 = vsub.s32 %v356_v23, %v1942_v4  ;;  %v383_v30 = vsub.s32 %v365_v27, %v1942_v4  ;;  %v359_v32 = vld [vmem:[%s1919_s29 + $0x38] sm:$0xff]  ;;  %v358_v33 = vld [vmem:[%s1919_s29 + $0x30] sm:$0xff] }
  0x30   : > { %1515 = vmatprep.subr.bf16.mxu0 %v1689_v14  ;;  %1578 = vmatprep.subr.bf16.mxu1 %v1689_v14  ;;  %v364_v28 = vld [vmem:[%s1919_s29 + $0x60] sm:$0xff]  ;;  %v1693_v34 = vld [vmem:[%s1934_s15 + $0x10] sm:$0xff]   ;;  %v377_v35 = vsub.s32 %v359_v32, %v1942_v4  ;;  %v376_v36 = vsub.s32 %v358_v33, %v1942_v4  ;;  %v367_v37 = vld [vmem:[%s1919_s29 + $0x78] sm:$0xff] }
  0x31   : > { %v382_v31 = vsub.s32 %v364_v28, %v1942_v4  ;;  %v366_v38 = vld [vmem:[%s1919_s29 + $0x70] sm:$0xff]  ;;  %v1694_v39 = vld [vmem:[%s1934_s15 + $0x8] sm:$0xff]   ;;  %v385_v40 = vsub.s32 %v367_v37, %v1942_v4  ;;  %v1695_v42 = vld [vmem:[%s1934_s15] sm:$0xff]  }
  0x32   : > { %416 = vperm.xlu1 %1687, %v379_v9   ;;  %392 = vperm.xlu0 %1686, %v371_v10   ;;  %v384_v41 = vsub.s32 %v366_v38, %v1942_v4  ;;  %v494_v62 = vld [vmem:[#allocation2 + $0x58] sm:$0xff]  ;;  %v492_v0 = vld [vmem:[#allocation2 + $0x30] sm:$0xff]  ;;  %v493_v8 = vld [vmem:[#allocation2] sm:$0xff] }
  0x33   : > { %1516 = vmatpush3.bf16.msra.mxu0 %v1689_v14  ;;  %1586 = vmatpush3.bf16.msra.mxu1 %v1689_v14  ;;  %v495_v3 = vld [vmem:[#allocation2 + $0x18] sm:$0xff]  ;;  %v502_v4 = vld [vmem:[#allocation2 + $0x10] sm:$0xff]  ;;  %v500_v9 = vld [vmem:[#allocation2 + $0x40] sm:$0xff] }
  0x34   : > { %1517 = vmatprep.subr.bf16.mxu0 %v1690_v19  ;;  %1579 = vmatprep.subr.bf16.mxu1 %v1690_v19  ;;  %v503_v14 = vld [vmem:[#allocation2 + $0x38] sm:$0xff]  ;;  %v501_v18 = vld [vmem:[#allocation2 + $0x20] sm:$0xff]  ;;  %v498_v22 = vld [vmem:[#allocation2 + $0x8] sm:$0xff] }
  0x35   : > { %v499_v27 = vld [vmem:[#allocation2 + $0x48] sm:$0xff]  ;;  %v506_v28 = vld [vmem:[#allocation2 + $0x78] sm:$0xff]  ;;  %v504_v33 = vld [vmem:[#allocation2 + $0x60] sm:$0xff] }
  0x36   : > { %398 = vperm.xlu1 %1687, %v373_v15   ;;  %395 = vperm.xlu0 %1686, %v372_v16   ;;  %v497_v32 = vld [vmem:[#allocation2 + $0x68] sm:$0xff] }
  0x37   : > { %1518 = vmatpush3.bf16.msra.mxu0 %v1690_v19  ;;  %1587 = vmatpush3.bf16.msra.mxu1 %v1690_v19  ;;  %v507_v38 = vld [vmem:[#allocation2 + $0x28] sm:$0xff] }
  0x38   : > { %1519 = vmatprep.subr.bf16.mxu0 %v1691_v24  ;;  %1580 = vmatprep.subr.bf16.mxu1 %v1691_v24 }
  0x3a   : > { %422 = vperm.xlu1 %1687, %v381_v20   ;;  %419 = vperm.xlu0 %1686, %v380_v21  }
  0x3b   : > { %1520 = vmatpush3.bf16.msra.mxu0 %v1691_v24  ;;  %1588 = vmatpush3.bf16.msra.mxu1 %v1691_v24  ;;  %v496_v24 = vld [vmem:[#allocation2 + $0x50] sm:$0xff] }
  0x3c   : > { %1521 = vmatprep.subr.bf16.mxu0 %v1692_v29  ;;  %1581 = vmatprep.subr.bf16.mxu1 %v1692_v29 }
  0x3e   : > { %404 = vperm.xlu1 %1687, %v375_v25   ;;  %401 = vperm.xlu0 %1686, %v374_v26  }
  0x3f   : > { %1522 = vmatpush3.bf16.msra.mxu0 %v1692_v29  ;;  %1589 = vmatpush3.bf16.msra.mxu1 %v1692_v29 }
  0x40   : > { %1523 = vmatprep.subr.bf16.mxu0 %v1693_v34  ;;  %1582 = vmatprep.subr.bf16.mxu1 %v1693_v34 }
  0x42   : > { %428 = vperm.xlu1 %1687, %v383_v30   ;;  %425 = vperm.xlu0 %1686, %v382_v31  }
  0x43   : > { %1524 = vmatpush3.bf16.msra.mxu0 %v1693_v34  ;;  %1590 = vmatpush3.bf16.msra.mxu1 %v1693_v34 }
  0x44   : > { %1525 = vmatprep.subr.bf16.mxu0 %v1694_v39  ;;  %1583 = vmatprep.subr.bf16.mxu1 %v1694_v39 }
  0x46   : > { %410 = vperm.xlu1 %1687, %v377_v35   ;;  %407 = vperm.xlu0 %1686, %v376_v36  }
  0x47   : > { %1526 = vmatpush3.bf16.msra.mxu0 %v1694_v39  ;;  %1591 = vmatpush3.bf16.msra.mxu1 %v1694_v39 }
  0x48   : > { %1527 = vmatprep.subr.bf16.mxu0 %v1695_v42  ;;  %1584 = vmatprep.subr.bf16.mxu1 %v1695_v42 }
  0x4a   : > { %434 = vperm.xlu1 %1687, %v385_v40   ;;  %431 = vperm.xlu0 %1686, %v384_v41  }
  0x4b   : > { %1528 = vmatpush3.bf16.msra.mxu0 %v1695_v42  ;;  %1592 = vmatpush3.bf16.msra.mxu1 %v1695_v42  ;;  %v505_v42 = vld [vmem:[#allocation2 + $0x70] sm:$0xff] }
  0xa9   : > { %v414_v44 = vpop.permute.xlu1 %413  ;;  %v390_v45 = vpop.permute.xlu0 %389 }
  0xaa   : > { %vm436_vm0 = vcmp.eq.s32.totalorder %v387_v46, %v390_v45  ;;  %vm444_vm3 = vcmp.eq.s32.totalorder %v387_v46, %v414_v44 }
  0xad   : > { %v417_v47 = vpop.permute.xlu1 %416  ;;  %v393_v48 = vpop.permute.xlu0 %392 }
  0xae   : > { %vm445_vm1 = vcmp.eq.s32.totalorder %v387_v46, %v417_v47  ;;  %vm437_vm2 = vcmp.eq.s32.totalorder %v387_v46, %v393_v48 }
  0xaf   : > { %vm1346_vm4 = vmpackc.low %vm437_vm2, %vm436_vm0 }
  0xb0   : > { %1529 = vmatprep.mubr.msk.bf16.mxu0 %vm1346_vm4, %v1802_v49  ;;  %vm1354_vm5 = vmpackc.low %vm445_vm1, %vm444_vm3 }
  0xb1   : > { %1537 = vmatprep.mubr.msk.bf16.mxu1 %vm1354_vm5, %v1802_v49  ;;  %v399_v50 = vpop.permute.xlu1 %398  ;;  %v396_v51 = vpop.permute.xlu0 %395 }
  0xb2   : > { %vm439_vm6 = vcmp.eq.s32.totalorder %v387_v46, %v399_v50  ;;  %vm438_vm7 = vcmp.eq.s32.totalorder %v387_v46, %v396_v51 }
  0xb3   : > { %vm1348_vm8 = vmpackc.low %vm439_vm6, %vm438_vm7 }
  0xb4   : > { %1530 = vmatmul.mubr.msk.bf16.vlgmr.msra.gmra.mxu0 %vm1348_vm8, %v1802_v49 }
  0xb5   : > { %v423_v52 = vpop.permute.xlu1 %422  ;;  %v420_v53 = vpop.permute.xlu0 %419 }
  0xb6   : > { %vm447_vm9 = vcmp.eq.s32.totalorder %v387_v46, %v423_v52  ;;  %vm446_vm10 = vcmp.eq.s32.totalorder %v387_v46, %v420_v53 }
  0xb7   : > { %vm1356_vm11 = vmpackc.low %vm447_vm9, %vm446_vm10 }
  0xb8   : > { %1538 = vmatmul.mubr.msk.bf16.vlgmr.msra.gmra.mxu1 %vm1356_vm11, %v1802_v49 }
  0xb9   : > { %v405_v54 = vpop.permute.xlu1 %404  ;;  %v402_v55 = vpop.permute.xlu0 %401 }
  0xba   : > { %vm441_vm12 = vcmp.eq.s32.totalorder %v387_v46, %v405_v54  ;;  %vm440_vm13 = vcmp.eq.s32.totalorder %v387_v46, %v402_v55 }
  0xbb   : > { %vm1350_vm14 = vmpackc.low %vm441_vm12, %vm440_vm13 }
  0xbc   : > { %1533 = vmatprep.mubr.msk.bf16.mxu0 %vm1350_vm14, %v1802_v49 }
  0xbd   : > { %v429_v56 = vpop.permute.xlu1 %428  ;;  %v426_v57 = vpop.permute.xlu0 %425 }
  0xbe   : > { %vm449_vm15 = vcmp.eq.s32.totalorder %v387_v46, %v429_v56  ;;  %vm448_vm0 = vcmp.eq.s32.totalorder %v387_v46, %v426_v57 }
  0xbf   : > { %vm1358_vm1 = vmpackc.low %vm449_vm15, %vm448_vm0 }
  0xc0   : > { %1541 = vmatprep.mubr.msk.bf16.mxu1 %vm1358_vm1, %v1802_v49 }
  0xc1   : > { %v411_v58 = vpop.permute.xlu1 %410  ;;  %v408_v59 = vpop.permute.xlu0 %407 }
  0xc2   : > { %vm443_vm2 = vcmp.eq.s32.totalorder %v387_v46, %v411_v58  ;;  %vm442_vm3 = vcmp.eq.s32.totalorder %v387_v46, %v408_v59 }
  0xc3   : > { %vm1352_vm4 = vmpackc.low %vm443_vm2, %vm442_vm3 }
  0xc4   : > { %1534 = vmatmul.mubr.msk.bf16.gmra.mxu0 %vm1352_vm4, %v1802_v49 }
  0xc5   : > { %v435_v60 = vpop.permute.xlu1 %434  ;;  %v432_v61 = vpop.permute.xlu0 %431 }
  0xc6   : > { %vm451_vm5 = vcmp.eq.s32.totalorder %v387_v46, %v435_v60  ;;  %vm450_vm6 = vcmp.eq.s32.totalorder %v387_v46, %v432_v61 }
  0xc7   : > { %vm1360_vm7 = vmpackc.low %vm451_vm5, %vm450_vm6 }
  0xc8   : > { %1542 = vmatmul.mubr.msk.bf16.gmra.mxu1 %vm1360_vm7, %v1802_v49 }
 0x174   : > { %v1531_v63 = vpop.f32.mrf.mxu0 }
 0x175   : > { %v671_v1 = vadd.f32 %v1531_v63, %v494_v62 }
 0x176   : > { %v606_v2 = vpop.f32.mrf.mxu0 }
 0x177   : > { %687 = vst [vmem:[#allocation2 + $0x58] sm:$0xff] %v671_v1  ;;  %v669_v5 = vadd.f32 %v606_v2, %v492_v0 }
 0x178   : > { %v1532_v6 = vpop.f32.mrf.mxu0  ;;  %v1539_v7 = vpop.f32.mrf.mxu1 }
 0x179   : > { %685 = vst [vmem:[#allocation2 + $0x30] sm:$0xff] %v669_v5  ;;  %v672_v10 = vadd.f32 %v1532_v6, %v495_v3  ;;  %v679_v11 = vadd.f32 %v1539_v7, %v502_v4 }
 0x17a   : > { %v609_v12 = vpop.f32.mrf.mxu0  ;;  %v638_v13 = vpop.f32.mrf.mxu1 }
 0x17b   : > { %688 = vst [vmem:[#allocation2 + $0x18] sm:$0xff] %v672_v10  ;;  %695 = vst [vmem:[#allocation2 + $0x10] sm:$0xff] %v679_v11  ;;  %v670_v15 = vadd.f32 %v609_v12, %v493_v8  ;;  %v677_v16 = vadd.f32 %v638_v13, %v500_v9 }
 0x17c   : > { %v1540_v17 = vpop.f32.mrf.mxu1 }
 0x17d   : > { %686 = vst [vmem:[#allocation2] sm:$0xff] %v670_v15  ;;  %693 = vst [vmem:[#allocation2 + $0x40] sm:$0xff] %v677_v16  ;;  %v680_v19 = vadd.f32 %v1540_v17, %v503_v14 }
 0x17e   : > { %v641_v20 = vpop.f32.mrf.mxu1 }
 0x17f   : > { %696 = vst [vmem:[#allocation2 + $0x38] sm:$0xff] %v680_v19  ;;  %v678_v21 = vadd.f32 %v641_v20, %v501_v18 }
 0x181   : > { %694 = vst [vmem:[#allocation2 + $0x20] sm:$0xff] %v678_v21 }
 0x184   : > { %v1535_v23 = vpop.f32.mrf.mxu0 }
 0x185   : > { %v675_v25 = vadd.f32 %v1535_v23, %v498_v22 }
 0x186   : > { %v622_v26 = vpop.f32.mrf.mxu0 }
 0x187   : > { %691 = vst [vmem:[#allocation2 + $0x8] sm:$0xff] %v675_v25  ;;  %v673_v29 = vadd.f32 %v622_v26, %v496_v24 }
 0x188   : > { %v1536_v30 = vpop.f32.mrf.mxu0  ;;  %v1543_v31 = vpop.f32.mrf.mxu1 }
 0x189   : > { %689 = vst [vmem:[#allocation2 + $0x50] sm:$0xff] %v673_v29  ;;  %v676_v34 = vadd.f32 %v1536_v30, %v499_v27  ;;  %v683_v35 = vadd.f32 %v1543_v31, %v506_v28 }
 0x18a   : > { %v625_v36 = vpop.f32.mrf.mxu0  ;;  %v654_v37 = vpop.f32.mrf.mxu1 }
 0x18b   : > { %692 = vst [vmem:[#allocation2 + $0x48] sm:$0xff] %v676_v34  ;;  %699 = vst [vmem:[#allocation2 + $0x78] sm:$0xff] %v683_v35  ;;  %v674_v39 = vadd.f32 %v625_v36, %v497_v32  ;;  %v681_v40 = vadd.f32 %v654_v37, %v504_v33 }
 0x18c   : > { %v1544_v41 = vpop.f32.mrf.mxu1 }
 0x18d   : > { %690 = vst [vmem:[#allocation2 + $0x68] sm:$0xff] %v674_v39  ;;  %697 = vst [vmem:[#allocation2 + $0x60] sm:$0xff] %v681_v40  ;;  %v684_v43 = vadd.f32 %v1544_v41, %v507_v38  ;;  %704 = sbr.rel (%p1362_p1) target bundleno = 792 (0x318), region = 52 }
 0x18e   : > { %v657_v44 = vpop.f32.mrf.mxu1 }
 0x18f   : > { %700 = vst [vmem:[#allocation2 + $0x28] sm:$0xff] %v684_v43  ;;  %v682_v45 = vadd.f32 %v657_v44, %v505_v42 }
 0x191   : > { %698 = vst [vmem:[#allocation2 + $0x70] sm:$0xff] %v682_v45 }
 0x192   : > { %v814_v46 = vld [vmem:[%s1929_s27 + $0x40] sm:$0xff]  ;;  %v1803_v48 = vmov 0   ;;  %v815_v49 = vld [vmem:[%s1929_s27 + $0x48] sm:$0xff]  ;;  %v809_v51 = vld [vmem:[%s1929_s27 + $0x18] sm:$0xff] }
 0x193   : > { %v806_v47 = vld [vmem:[%s1929_s27] sm:$0xff]  ;;  %1697 = vset.pattern.permute.xlu1 %v1803_v48  ;;  %1696 = vset.pattern.permute.xlu0 %v1803_v48  ;;  %v807_v50 = vld [vmem:[%s1929_s27 + $0x8] sm:$0xff]  ;;  %v808_v52 = vld [vmem:[%s1929_s27 + $0x10] sm:$0xff] }
 0x194   : > { %864 = vperm.xlu1 %1697, %v814_v46   ;;  %824 = vperm.xlu0 %1696, %v806_v47   ;;  %v817_v53 = vld [vmem:[%s1929_s27 + $0x58] sm:$0xff]  ;;  %v816_v54 = vld [vmem:[%s1929_s27 + $0x50] sm:$0xff]  ;;  %v707_v57 = vld [vmem:[%s1924_s12 + $0x8] sm:$0xff] }
 0x195   : > { %v1698_v55 = vld [vmem:[%s2135_s5 + $0x38] sm:$0xff]   ;;  %v1699_v56 = vld [vmem:[%s2135_s5 + $0x30] sm:$0xff]   ;;  %v706_v58 = vld [vmem:[%s1924_s12] sm:$0xff] }
 0x196   : > { %1545 = vmatprep.subr.bf16.mxu0 %v1698_v55  ;;  %1593 = vmatprep.subr.bf16.mxu1 %v1698_v55  ;;  %v1700_v59 = vld [vmem:[%s2135_s5 + $0x28] sm:$0xff]   ;;  %v714_v61 = vld [vmem:[%s1924_s12 + $0x40] sm:$0xff]  ;;  %v709_v63 = vld [vmem:[%s1924_s12 + $0x18] sm:$0xff] }
 0x197   : > { %1546 = vmatpush3.bf16.msra.mxu0 %v1698_v55  ;;  %1601 = vmatpush3.bf16.msra.mxu1 %v1698_v55  ;;  %v715_v60 = vld [vmem:[%s1924_s12 + $0x48] sm:$0xff]  ;;  %v1701_v62 = vld [vmem:[%s2135_s5 + $0x20] sm:$0xff]   ;;  %v708_v0 = vld [vmem:[%s1924_s12 + $0x10] sm:$0xff] }
 0x198   : > { %869 = vperm.xlu1 %1697, %v815_v49   ;;  %829 = vperm.xlu0 %1696, %v807_v50   ;;  %v1702_v1 = vld [vmem:[%s2135_s5 + $0x18] sm:$0xff]   ;;  %v716_v3 = vld [vmem:[%s1924_s12 + $0x50] sm:$0xff]  ;;  %v811_v5 = vld [vmem:[%s1929_s27 + $0x28] sm:$0xff] }
 0x199   : > { %1547 = vmatprep.subr.bf16.mxu0 %v1699_v56  ;;  %1594 = vmatprep.subr.bf16.mxu1 %v1699_v56  ;;  %v717_v2 = vld [vmem:[%s1924_s12 + $0x58] sm:$0xff]  ;;  %v1703_v4 = vld [vmem:[%s2135_s5 + $0x10] sm:$0xff]   ;;  %v810_v6 = vld [vmem:[%s1929_s27 + $0x20] sm:$0xff] }
 0x19a   : > { %v1704_v7 = vld [vmem:[%s2135_s5 + $0x8] sm:$0xff]   ;;  %v818_v9 = vld [vmem:[%s1929_s27 + $0x60] sm:$0xff]  ;;  %v813_v11 = vld [vmem:[%s1929_s27 + $0x38] sm:$0xff] }
 0x19b   : > { %1548 = vmatpush3.bf16.msra.mxu0 %v1699_v56  ;;  %1602 = vmatpush3.bf16.msra.mxu1 %v1699_v56  ;;  %v819_v8 = vld [vmem:[%s1929_s27 + $0x68] sm:$0xff]  ;;  %v1705_v10 = vld [vmem:[%s2135_s5] sm:$0xff]   ;;  %v812_v12 = vld [vmem:[%s1929_s27 + $0x30] sm:$0xff] }
 0x19c   : > { %839 = vperm.xlu1 %1697, %v809_v51   ;;  %834 = vperm.xlu0 %1696, %v808_v52   ;;  %v821_v13 = vld [vmem:[%s1929_s27 + $0x78] sm:$0xff]  ;;  %v820_v14 = vld [vmem:[%s1929_s27 + $0x70] sm:$0xff]  ;;  %v711_v15 = vld [vmem:[%s1924_s12 + $0x28] sm:$0xff] }
 0x19d   : > { %1549 = vmatprep.subr.bf16.mxu0 %v1700_v59  ;;  %1595 = vmatprep.subr.bf16.mxu1 %v1700_v59  ;;  %v710_v16 = vld [vmem:[%s1924_s12 + $0x20] sm:$0xff]  ;;  %v719_v17 = vld [vmem:[%s1924_s12 + $0x68] sm:$0xff]  ;;  %v713_v19 = vld [vmem:[%s1924_s12 + $0x38] sm:$0xff] }
 0x19e   : > { %v718_v18 = vld [vmem:[%s1924_s12 + $0x60] sm:$0xff]  ;;  %v712_v20 = vld [vmem:[%s1924_s12 + $0x30] sm:$0xff]  ;;  %v721_v21 = vld [vmem:[%s1924_s12 + $0x78] sm:$0xff] }
 0x19f   : > { %1550 = vmatpush3.bf16.msra.mxu0 %v1700_v59  ;;  %1603 = vmatpush3.bf16.msra.mxu1 %v1700_v59  ;;  %v720_v22 = vld [vmem:[%s1924_s12 + $0x70] sm:$0xff]  ;;  %v791_v29 = vld [vmem:[#allocation2] sm:$0xff]  ;;  %v793_v41 = vld [vmem:[#allocation2 + $0x18] sm:$0xff] }
 0x1a0   : > { %879 = vperm.xlu1 %1697, %v817_v53   ;;  %874 = vperm.xlu0 %1696, %v816_v54   ;;  %v790_v30 = vld [vmem:[#allocation2 + $0x30] sm:$0xff]  ;;  %v799_v34 = vld [vmem:[#allocation2 + $0x20] sm:$0xff]  ;;  %v792_v42 = vld [vmem:[#allocation2 + $0x58] sm:$0xff] }
 0x1a1   : > { %1551 = vmatprep.subr.bf16.mxu0 %v1701_v62  ;;  %1596 = vmatprep.subr.bf16.mxu1 %v1701_v62  ;;  %v2042_v35 = vld [vmem:[%s2133_s3] ss:$0 sm:$0xff]  ;;  %v801_v50 = vld [vmem:[#allocation2 + $0x38] sm:$0xff]  ;;  %v800_v51 = vld [vmem:[#allocation2 + $0x10] sm:$0xff] }
 0x1a2   : > { %v798_v37 = vld [vmem:[#allocation2 + $0x40] sm:$0xff] }
 0x1a3   : > { %1552 = vmatpush3.bf16.msra.mxu0 %v1701_v62  ;;  %1604 = vmatpush3.bf16.msra.mxu1 %v1701_v62 }
 0x1a4   : > { %730 = vperm.xlu1 %1697, %v707_v57   ;;  %727 = vperm.xlu0 %1696, %v706_v58  }
 0x1a5   : > { %1553 = vmatprep.subr.bf16.mxu0 %v1702_v1  ;;  %1597 = vmatprep.subr.bf16.mxu1 %v1702_v1 }
 0x1a7   : > { %1554 = vmatpush3.bf16.msra.mxu0 %v1702_v1  ;;  %1605 = vmatpush3.bf16.msra.mxu1 %v1702_v1 }
 0x1a8   : > { %754 = vperm.xlu1 %1697, %v715_v60   ;;  %751 = vperm.xlu0 %1696, %v714_v61  }
 0x1a9   : > { %1555 = vmatprep.subr.bf16.mxu0 %v1703_v4  ;;  %1598 = vmatprep.subr.bf16.mxu1 %v1703_v4 }
 0x1ab   : > { %1556 = vmatpush3.bf16.msra.mxu0 %v1703_v4  ;;  %1606 = vmatpush3.bf16.msra.mxu1 %v1703_v4 }
 0x1ac   : > { %736 = vperm.xlu1 %1697, %v709_v63   ;;  %733 = vperm.xlu0 %1696, %v708_v0  }
 0x1ad   : > { %1557 = vmatprep.subr.bf16.mxu0 %v1704_v7  ;;  %1599 = vmatprep.subr.bf16.mxu1 %v1704_v7 }
 0x1af   : > { %1558 = vmatpush3.bf16.msra.mxu0 %v1704_v7  ;;  %1607 = vmatpush3.bf16.msra.mxu1 %v1704_v7 }
 0x1b0   : > { %760 = vperm.xlu1 %1697, %v717_v2   ;;  %757 = vperm.xlu0 %1696, %v716_v3   ;;  %v795_v2 = vld [vmem:[#allocation2 + $0x68] sm:$0xff]  ;;  %v794_v3 = vld [vmem:[#allocation2 + $0x50] sm:$0xff] }
 0x1b1   : > { %1559 = vmatprep.subr.bf16.mxu0 %v1705_v10  ;;  %1600 = vmatprep.subr.bf16.mxu1 %v1705_v10 }
 0x1b3   : > { %1560 = vmatpush3.bf16.msra.mxu0 %v1705_v10  ;;  %1608 = vmatpush3.bf16.msra.mxu1 %v1705_v10 }
 0x1b4   : > { %849 = vperm.xlu1 %1697, %v811_v5   ;;  %844 = vperm.xlu0 %1696, %v810_v6  }
 0x1b8   : > { %889 = vperm.xlu1 %1697, %v819_v8   ;;  %884 = vperm.xlu0 %1696, %v818_v9   ;;  %v803_v8 = vld [vmem:[#allocation2 + $0x70] sm:$0xff]  ;;  %v802_v9 = vld [vmem:[#allocation2 + $0x60] sm:$0xff] }
 0x1bc   : > { %859 = vperm.xlu1 %1697, %v813_v11   ;;  %854 = vperm.xlu0 %1696, %v812_v12  }
 0x1c0   : > { %899 = vperm.xlu1 %1697, %v821_v13   ;;  %894 = vperm.xlu0 %1696, %v820_v14  }
 0x1c4   : > { %742 = vperm.xlu1 %1697, %v711_v15   ;;  %739 = vperm.xlu0 %1696, %v710_v16   ;;  %v797_v15 = vld [vmem:[#allocation2 + $0x48] sm:$0xff] }
 0x1c5   : > { %v796_v16 = vld [vmem:[#allocation2 + $0x8] sm:$0xff] }
 0x1c8   : > { %766 = vperm.xlu1 %1697, %v719_v17   ;;  %763 = vperm.xlu0 %1696, %v718_v18  }
 0x1cc   : > { %748 = vperm.xlu1 %1697, %v713_v19   ;;  %745 = vperm.xlu0 %1696, %v712_v20  }
 0x1d0   : > { %772 = vperm.xlu1 %1697, %v721_v21   ;;  %769 = vperm.xlu0 %1696, %v720_v22   ;;  %v805_v22 = vld [vmem:[#allocation2 + $0x28] sm:$0xff] }
 0x20f   : > { %v865_v23 = vpop.permute.xlu1 %864  ;;  %v825_v24 = vpop.permute.xlu0 %824 }
 0x210   : > { %v902_v36 = vmul.f32 %v825_v24, %v790_v30  ;;  %v910_v44 = vmul.f32 %v865_v23, %v798_v37  ;;  %v804_v23 = vld [vmem:[#allocation2 + $0x78] sm:$0xff] }
 0x213   : > { %v870_v25 = vpop.permute.xlu1 %869  ;;  %v830_v26 = vpop.permute.xlu0 %829 }
 0x214   : > { %v903_v33 = vmul.f32 %v830_v26, %v791_v29  ;;  %v911_v40 = vmul.f32 %v870_v25, %v799_v34 }
 0x216   : > { %v1373_v43 = vpack.c.bf16 %v903_v33, %v902_v36  ;;  %v1385_v49 = vpack.c.bf16 %v911_v40, %v910_v44 }
 0x217   : > { %v840_v27 = vpop.permute.xlu1 %839  ;;  %v835_v28 = vpop.permute.xlu0 %834 }
 0x218   : > { %v905_v45 = vmul.f32 %v840_v27, %v793_v41  ;;  %v904_v46 = vmul.f32 %v835_v28, %v792_v42 }
 0x21a   : > { %v1376_v52 = vpack.c.bf16 %v905_v45, %v904_v46 }
 0x21b   : > { %v880_v31 = vpop.permute.xlu1 %879  ;;  %v875_v32 = vpop.permute.xlu0 %874 }
 0x21c   : > { %v913_v55 = vmul.f32 %v880_v31, %v801_v50  ;;  %v912_v56 = vmul.f32 %v875_v32, %v800_v51 }
 0x21e   : > { %v1388_v59 = vpack.c.bf16 %v913_v55, %v912_v56 }
 0x21f   : > { %v731_v38 = vpop.permute.xlu1 %730  ;;  %v728_v39 = vpop.permute.xlu0 %727 }
 0x220   : > { %vm775_vm8 = vcmp.eq.s32.totalorder %v2042_v35, %v731_v38  ;;  %vm774_vm9 = vcmp.eq.s32.totalorder %v2042_v35, %v728_v39 }
 0x221   : > { %vm1372_vm10 = vmpackc.low %vm775_vm8, %vm774_vm9 }
 0x222   : > { %1561 = vmatprep.mubr.msk.bf16.mxu0 %vm1372_vm10, %v1373_v43 }
 0x223   : > { %v755_v47 = vpop.permute.xlu1 %754  ;;  %v752_v48 = vpop.permute.xlu0 %751 }
 0x224   : > { %vm783_vm11 = vcmp.eq.s32.totalorder %v2042_v35, %v755_v47  ;;  %vm782_vm12 = vcmp.eq.s32.totalorder %v2042_v35, %v752_v48 }
 0x225   : > { %vm1384_vm13 = vmpackc.low %vm783_vm11, %vm782_vm12 }
 0x226   : > { %1569 = vmatprep.mubr.msk.bf16.mxu1 %vm1384_vm13, %v1385_v49 }
 0x227   : > { %v737_v53 = vpop.permute.xlu1 %736  ;;  %v734_v54 = vpop.permute.xlu0 %733 }
 0x228   : > { %vm777_vm14 = vcmp.eq.s32.totalorder %v2042_v35, %v737_v53  ;;  %vm776_vm15 = vcmp.eq.s32.totalorder %v2042_v35, %v734_v54 }
 0x229   : > { %vm1375_vm0 = vmpackc.low %vm777_vm14, %vm776_vm15 }
 0x22a   : > { %1562 = vmatmul.mubr.msk.bf16.vlgmr.msra.gmra.mxu0 %vm1375_vm0, %v1376_v52 }
 0x22b   : > { %v761_v57 = vpop.permute.xlu1 %760  ;;  %v758_v58 = vpop.permute.xlu0 %757 }
 0x22c   : > { %vm785_vm1 = vcmp.eq.s32.totalorder %v2042_v35, %v761_v57  ;;  %vm784_vm2 = vcmp.eq.s32.totalorder %v2042_v35, %v758_v58 }
 0x22d   : > { %vm1387_vm3 = vmpackc.low %vm785_vm1, %vm784_vm2 }
 0x22e   : > { %1570 = vmatmul.mubr.msk.bf16.vlgmr.msra.gmra.mxu1 %vm1387_vm3, %v1388_v59 }
 0x22f   : > { %v850_v60 = vpop.permute.xlu1 %849  ;;  %v845_v61 = vpop.permute.xlu0 %844 }
 0x230   : > { %v907_v4 = vmul.f32 %v850_v60, %v795_v2  ;;  %v906_v5 = vmul.f32 %v845_v61, %v794_v3 }
 0x232   : > { %v1379_v10 = vpack.c.bf16 %v907_v4, %v906_v5 }
 0x233   : > { %v890_v62 = vpop.permute.xlu1 %889  ;;  %v885_v63 = vpop.permute.xlu0 %884 }
 0x234   : > { %v915_v13 = vmul.f32 %v890_v62, %v803_v8  ;;  %v914_v14 = vmul.f32 %v885_v63, %v802_v9 }
 0x236   : > { %v1391_v21 = vpack.c.bf16 %v915_v13, %v914_v14 }
 0x237   : > { %v860_v0 = vpop.permute.xlu1 %859  ;;  %v855_v1 = vpop.permute.xlu0 %854 }
 0x238   : > { %v909_v17 = vmul.f32 %v860_v0, %v797_v15  ;;  %v908_v18 = vmul.f32 %v855_v1, %v796_v16 }
 0x23a   : > { %v1382_v24 = vpack.c.bf16 %v909_v17, %v908_v18 }
 0x23b   : > { %v900_v6 = vpop.permute.xlu1 %899  ;;  %v895_v7 = vpop.permute.xlu0 %894 }
 0x23c   : > { %v917_v27 = vmul.f32 %v900_v6, %v805_v22  ;;  %v916_v28 = vmul.f32 %v895_v7, %v804_v23 }
 0x23e   : > { %v1394_v31 = vpack.c.bf16 %v917_v27, %v916_v28 }
 0x23f   : > { %v743_v11 = vpop.permute.xlu1 %742  ;;  %v740_v12 = vpop.permute.xlu0 %739 }
 0x240   : > { %vm779_vm4 = vcmp.eq.s32.totalorder %v2042_v35, %v743_v11  ;;  %vm778_vm5 = vcmp.eq.s32.totalorder %v2042_v35, %v740_v12 }
 0x241   : > { %vm1378_vm6 = vmpackc.low %vm779_vm4, %vm778_vm5 }
 0x242   : > { %1565 = vmatprep.mubr.msk.bf16.mxu0 %vm1378_vm6, %v1379_v10 }
 0x243   : > { %v767_v19 = vpop.permute.xlu1 %766  ;;  %v764_v20 = vpop.permute.xlu0 %763 }
 0x244   : > { %vm787_vm7 = vcmp.eq.s32.totalorder %v2042_v35, %v767_v19  ;;  %vm786_vm8 = vcmp.eq.s32.totalorder %v2042_v35, %v764_v20 }
 0x245   : > { %vm1390_vm9 = vmpackc.low %vm787_vm7, %vm786_vm8 }
 0x246   : > { %1573 = vmatprep.mubr.msk.bf16.mxu1 %vm1390_vm9, %v1391_v21 }
 0x247   : > { %v749_v25 = vpop.permute.xlu1 %748  ;;  %v746_v26 = vpop.permute.xlu0 %745 }
 0x248   : > { %vm781_vm10 = vcmp.eq.s32.totalorder %v2042_v35, %v749_v25  ;;  %vm780_vm11 = vcmp.eq.s32.totalorder %v2042_v35, %v746_v26 }
 0x249   : > { %vm1381_vm12 = vmpackc.low %vm781_vm10, %vm780_vm11 }
 0x24a   : > { %1566 = vmatmul.mubr.msk.bf16.gmra.mxu0 %vm1381_vm12, %v1382_v24 }
 0x24b   : > { %v773_v29 = vpop.permute.xlu1 %772  ;;  %v770_v30 = vpop.permute.xlu0 %769 }
 0x24c   : > { %vm789_vm13 = vcmp.eq.s32.totalorder %v2042_v35, %v773_v29  ;;  %vm788_vm14 = vcmp.eq.s32.totalorder %v2042_v35, %v770_v30 }
 0x24d   : > { %vm1393_vm15 = vmpackc.low %vm789_vm13, %vm788_vm14 }
 0x24e   : > { %1574 = vmatmul.mubr.msk.bf16.gmra.mxu1 %vm1393_vm15, %v1394_v31 }
 0x2ea   : > { %v1563_v32 = vpop.f32.mrf.mxu0 }
 0x2ec   : > { %v1040_v33 = vpop.f32.mrf.mxu0 }
 0x2ee   : > { %v1564_v34 = vpop.f32.mrf.mxu0  ;;  %v1571_v36 = vpop.f32.mrf.mxu1 }
 0x2ef   : > { %v1442_v37 = vpack.c.bf16 %v1564_v34, %v1563_v32 }
 0x2f0   : > { %v1043_v38 = vpop.f32.mrf.mxu0  ;;  %v1072_v39 = vpop.f32.mrf.mxu1 }
 0x2f1   : > { %1474 = vst [vmem:[%s1936_s19 + $0x8] sm:$0xff] %v1442_v37   ;;  %v1437_v40 = vpack.c.bf16 %v1043_v38, %v1040_v33 }
 0x2f2   : > { %v1572_v41 = vpop.f32.mrf.mxu1 }
 0x2f3   : > { %1438 = vst [vmem:[%s1936_s19] sm:$0xff] %v1437_v40   ;;  %v1462_v42 = vpack.c.bf16 %v1572_v41, %v1571_v36 }
 0x2f4   : > { %v1075_v43 = vpop.f32.mrf.mxu1 }
 0x2f5   : > { %1478 = vst [vmem:[%s1936_s19 + $0x28] sm:$0xff] %v1462_v42   ;;  %v1457_v35 = vpack.c.bf16 %v1075_v43, %v1072_v39 }
 0x2f7   : > { %1477 = vst [vmem:[%s1936_s19 + $0x20] sm:$0xff] %v1457_v35  }
 0x30a   : > { %v1567_v44 = vpop.f32.mrf.mxu0 }
 0x30c   : > { %v1056_v45 = vpop.f32.mrf.mxu0 }
 0x30e   : > { %v1568_v46 = vpop.f32.mrf.mxu0  ;;  %v1575_v47 = vpop.f32.mrf.mxu1 }
 0x30f   : > { %v1452_v48 = vpack.c.bf16 %v1568_v46, %v1567_v44 }
 0x310   : > { %v1059_v49 = vpop.f32.mrf.mxu0  ;;  %v1088_v50 = vpop.f32.mrf.mxu1 }
 0x311   : > { %1476 = vst [vmem:[%s1936_s19 + $0x18] sm:$0xff] %v1452_v48   ;;  %v1447_v51 = vpack.c.bf16 %v1059_v49, %v1056_v45 }
 0x312   : > { %v1576_v52 = vpop.f32.mrf.mxu1 }
 0x313   : > { %1475 = vst [vmem:[%s1936_s19 + $0x10] sm:$0xff] %v1447_v51   ;;  %v1472_v53 = vpack.c.bf16 %v1576_v52, %v1575_v47 }
 0x314   : > { %v1091_v54 = vpop.f32.mrf.mxu1 }
 0x315   : > { %1480 = vst [vmem:[%s1936_s19 + $0x38] sm:$0xff] %v1472_v53   ;;  %v1467_v55 = vpack.c.bf16 %v1091_v54, %v1088_v50 }
 0x317   : > { %1479 = vst [vmem:[%s1936_s19 + $0x30] sm:$0xff] %v1467_v55  }
 0x318 PF: > { %s1433_s12 = sshll.u32 %s1786_s25, 10  ;;  %s1197_s17 = sshll.u32 %s1936_s19, 4  ;;  %s2075_s17 = int_to_ptr.vmem [resolvable:$true] %s1197_s17 }
 0x319   : > { %s2072_s16 = scalar_lea.hbm %s2136_s6, %s1433_s12  ;;  %s2148_s18 = sand.u32 1, %s1774_s22  }
 0x31a   : > { %s2079_s20 = scalar_lea.sflag [#allocation4], %s2148_s18  ;;  %s1706_s29 = scalar_lea.vmem %s2075_s17, 1024 }
 0x31b   : > { %p1707_p2 = scmp.ne.s32.totalorder %s2075_s17, %s1706_s29  ;;  %s1804_s25 = smov [#allocation3]  }
 0x31c   : > { %s1710_s30 = sshll.u32 %s1804_s25, 4  ;;  %s1711_s30 = int_to_ptr.vmem [resolvable:$false] %s1710_s30 }
 0x31d   : > { %p1708_p4 = pnand %p1707_p2, %p1891_p3  ;;  %s1712_s11 = scalar_lea.vmem %s1711_s30, 2048 }
 0x31e   : > { %p1713_p6 = scmp.lt.s32.totalorder %s2075_s17, %s1711_s30  ;;  %p1714_p7 = scmp.lt.s32.totalorder %s1712_s11, %s1706_s29 }
 0x31f   : > { %p1709_p5 = pneg %p1708_p4 }
 0x320   : > { %p1715_p8 = por %p1714_p7, %p1713_p6 }
 0x322   : > { %p1716_p10 = pnand %p1715_p8, %p1709_p5 }
 0x324   : > { %1719 = shalt.err (!%p1716_p10)
}
 0x325   : > { %s1720_s19 = scalar_lea.hbm %s2072_s16, 1024  ;;  %s1724_s24 = scalar_lea.hbm %s2136_s6, 3072 }
 0x326   : > { %p1721_p11 = scmp.ne.s32.totalorder %s2072_s16, %s1720_s19  ;;  %p1725_p0 = scmp.lt.s32.totalorder %s2072_s16, %s2136_s6 }
 0x327   : > { %p1726_p1 = scmp.lt.s32.totalorder %s1724_s24, %s1720_s19 }
 0x328   : > { %p1722_p12 = pnand %p1721_p11, %p1891_p3 }
 0x329   : > { %p1727_p2 = por %p1726_p1, %p1725_p0 }
 0x32a   : > { %p1723_p13 = pneg %p1722_p12 }
 0x32c   : > { %p1728_p4 = pnand %p1727_p2, %p1723_p13 }
 0x32e   : > { %1731 = shalt.err (!%p1728_p4)
}
 0x32f   : > { %s1805_s8 = smov 64   ;;  %s1806_s12 = smov 4  }
 0x330   : > { %1609 = dma.vmem_to_hbm [thread:$0]  (%p1891_p3), %s2075_s17, 1024, %s2072_s16, %s2079_s20, %s1805_s8, %s1805_s8, %s1806_s12  }
 0x331 PF: > { %p1615_p5 = scmp.ge.s32.totalorder %s1798_s28, 2  ;;  %s1212_s13 = sand.u32 1, %s1770_s21  }
 0x332   : > { %s1213_s14 = scalar_lea.sflag [#allocation4], %s1212_s13 }
 0x333   : > { %p1612_p6 = pnand %p1615_p5, %p1901_p9 }
 0x335   : > { %p1613_p7 = pneg %p1612_p6 }
 0x337   : > { %1765 = dma.done.wait (%p1613_p7), %s1213_s14, 1024  }
 0x338   : > { %1767 = vsyncadd (%p1613_p7), %s1213_s14, 4294966272  ;;  %s19_s28 = sadd.s32 1, %s1798_s28   ;;  %s2149_s18 = sld [smem:[#allocation10_spill]] }
 0x339   : > { %p16_p8 = scmp.ge.s32.totalorder %s19_s28, 8   ;;  %s2150_s24 = sld [smem:[#allocation6_spill]] }
 0x33a   : > { %s2151_s25 = sld [smem:[#allocation7_spill]]  ;;  %s2154_s21 = smov %s1774_s22 }
 0x33b   : > { %s2152_s26 = sld [smem:[#allocation8_spill]]  ;;  %s2155_s22 = smov %s1778_s23 }
 0x33c   : > { %s2153_s27 = sld [smem:[#allocation9_spill]]  ;;  %18 = sbr.rel (!%p16_p8) target bundleno = 5 (0x5), region = 96 }
 0x33e   : > { %s2156_s23 = smov %s2149_s18 }
 0x341   :  { %1218 = vsyncpa [#allocation4], 1 }
 0x342   :  { %1220 = vsyncpa [#allocation4 + $0x1], 1 }

</bundles_post_ra>
